<compile_context>
chip_gen: v7x
topology: tpu7x:2x2x1
jax: 0.10.0
libtpu: 0.0.40
codegen_flags: <defaults>
</compile_context>

<pallas_src>
import functools

import jax
import jax.numpy as jnp
from jax import lax
from jax.experimental import pallas as pl
from jax.experimental.pallas import tpu as pltpu


def _mlp_kernel(z_ref, w_in_ref, b_in_ref, w_h_ref, b_h_ref,
                w_out_ref, b_out_ref, o_ref, *, num_hidden_layers, act_dtype):
    """Fused pointwise-conv stack, transposed orientation (channels x time).

    z_ref:     (C_in, tl)   one batch element's (channels, time-tile) slab, f32
    w_in_ref:  (H, C_in)    Conv1d weight (out_ch, in_ch), kernel dim squeezed
    b_in_ref:  (H, 1)       f32
    w_h_ref:   (num_hidden_layers, H, H)
    b_h_ref:   (num_hidden_layers, H, 1)  f32
    w_out_ref: (C_out, H)
    b_out_ref: (C_out, 1)   f32
    o_ref:     (C_out, tl)  lane-dense output (time on the lane axis)
    """
    w_in = w_in_ref[...]
    # In-kernel cast of the f32 input slab to the MXU operand dtype (no
    # wrapper-side cast / extra HBM pass).
    z = z_ref[...].astype(w_in.dtype)

    # (H, C_in) @ (C_in, tl) -> (H, tl); f32 accumulation on the MXU, f32 bias.
    pre = jnp.dot(w_in, z, preferred_element_type=jnp.float32) + b_in_ref[...]
    # tanh in act_dtype (bf16 on v6e/v7x EUP, f32 on v5e / f32 path).  When
    # act_dtype == weight dtype, the next matmul consumes h with no extra cast.
    h = jnp.tanh(pre.astype(act_dtype))

    if num_hidden_layers <= 4:
        # Short fixed depth: static unroll (biases hoisted once).
        b_h = b_h_ref[...]
        for l in range(num_hidden_layers):
            w_l = w_h_ref[l]
            pre = jnp.dot(w_l, h.astype(w_l.dtype),
                          preferred_element_type=jnp.float32) + b_h[l]
            h = jnp.tanh(pre.astype(act_dtype))
    else:
        # Deep stacks: fori_loop keeps one (H, H) weight load live at a time
        # instead of growing vreg/VMEM pressure with the layer count.
        def layer(l, h):
            w_l = w_h_ref[l]
            pre = jnp.dot(w_l, h.astype(w_l.dtype),
                          preferred_element_type=jnp.float32) + b_h_ref[l]
            return jnp.tanh(pre.astype(act_dtype))
        h = lax.fori_loop(0, num_hidden_layers, layer, h)

    w_out = w_out_ref[...]
    # exp and the store stay f32 (output is f32 by default).
    o_ref[...] = jnp.exp(
        jnp.dot(w_out, h.astype(w_out.dtype),
                preferred_element_type=jnp.float32)
        + b_out_ref[...]).astype(o_ref.dtype)


def _device_info():
    """Returns (vmem_capacity_bytes, bf16_transcendentals_ok, tensorcores)."""
    vmem = 64 * 1024 * 1024          # conservative fallback (v7x per-core VMEM)
    try:
        cap = int(pltpu.get_tpu_info().vmem_capacity_bytes)
        if cap > 0:
            vmem = cap
    except Exception:
        pass
    kind = ""
    try:
        kind = jax.devices()[0].device_kind.lower()
    except Exception:
        pass
    old_gen = any(f"v{g}" in kind for g in (2, 3, 4, 5))
    bf16_eup = bool(kind) and not old_gen        # v6e / v7x have bf16 EUP/VPU
    num_cores = 2 if ("v7" in kind or "7x" in kind) else 1
    return vmem, bf16_eup, num_cores


def _choose_time_tile(B, C_in, H, C_out, num_hidden_layers, L,
                      compute_itemsize, vmem_budget_bytes, num_cores,
                      weight_buffer_count):
    """Largest lane-aligned L-tile under the VMEM budget (cdiv grid)."""
    # Weight / bias residency (single-buffered when pl.Buffered(1) is used).
    weight_bytes = weight_buffer_count * compute_itemsize * (
        H * C_in + num_hidden_layers * H * H + C_out * H)
    bias_bytes = weight_buffer_count * 4 * (H + num_hidden_layers * H + C_out)
    # Per time-column bytes:
    #   * z stays f32 in HBM (cast in-kernel); double-buffered input tile.
    #   * f32 output tile, double-buffered.
    #   * peak live activations: two f32 (H, tl) values (matmul accumulator +
    #     bias/tanh operand) plus one compute-dtype copy fed to the next MXU op.
    per_col = (2 * 4 * C_in + 2 * 4 * C_out + (2 * 4 + compute_itemsize) * H)
    avail = max(vmem_budget_bytes - weight_bytes - bias_bytes, 1 << 20)
    max_tl = max(int(avail // per_col), 128)

    if L <= max_tl:
        tl = L                           # whole sequence in one lane-dense tile
    else:
        # Budget-optimal multiple of 128; last tile may be partial (cdiv grid),
        # so L's factorization never forces tl=L or tl=128.
        tl = max((max_tl // 128) * 128, 128)

    # v7x has two TensorCores: split a single-cell grid so both get work.
    # On single-TC v5e/v6e the split would only add per-step overhead.
    if num_cores >= 2 and B * pl.cdiv(L, tl) < num_cores and L >= 256:
        per_core = pl.cdiv(L, num_cores)
        tl = max(128, ((per_core + 127) // 128) * 128)
    return tl


def generative_model_forward(z_ncl, params, *,
                             compute_dtype=jnp.bfloat16,
                             out_dtype=jnp.float32,
                             transcendental_dtype=None,
                             vmem_budget_bytes=None,
                             single_buffer_weights=True):
    """z_ncl: (B, input_dim, L) float32, NCL like the PyTorch Conv1d input."""
    w_in, b_in, w_h, b_h, w_out, b_out = params
    B, C_in, L = z_ncl.shape
    H = w_in.shape[0]
    C_out = w_out.shape[0]
    num_hidden_layers = w_h.shape[0]

    compute_dtype = jnp.dtype(compute_dtype)
    vmem_cap, bf16_eup, num_cores = _device_info()

    # Low-precision MXU path: cast only the (tiny) weights wrapper-side.
    # z is cast inside the kernel, avoiding a separate HBM read/write pass.
    if compute_dtype != jnp.dtype(jnp.float32):
        w_in = w_in.astype(compute_dtype)
        w_h = w_h.astype(compute_dtype)
        w_out = w_out.astype(compute_dtype)

    if transcendental_dtype is None:
        # bf16 tanh on v6e/v7x (bf16 EUP, ~2x); f32 tanh on v5e / f32 path.
        act_dtype = (jnp.bfloat16
                     if (compute_dtype == jnp.dtype(jnp.bfloat16) and bf16_eup)
                     else jnp.float32)
    else:
        act_dtype = jnp.dtype(transcendental_dtype)

    # Per-generation VMEM budget/limit: ~0.5x / ~0.75x of physical capacity
    # (128 MiB on v5e/v6e, 64 MiB on v7x).
    if vmem_budget_bytes is None:
        vmem_budget_bytes = vmem_cap // 2
    vmem_limit_bytes = min(max(vmem_cap * 3 // 4,
                               vmem_budget_bytes + (8 << 20)), vmem_cap)

    weight_buffer_count = 1 if single_buffer_weights else 2
    tl = _choose_time_tile(B, C_in, H, C_out, num_hidden_layers, L,
                           compute_dtype.itemsize, vmem_budget_bytes,
                           num_cores, weight_buffer_count)
    grid = (B, pl.cdiv(L, tl))          # partial last tile allowed

    kernel = functools.partial(_mlp_kernel,
                               num_hidden_layers=num_hidden_layers,
                               act_dtype=act_dtype)

    def _call(single_buffer):
        def w_spec(shape, index_map):
            # Grid-invariant weight/bias blocks: single-buffer to save VMEM.
            if single_buffer:
                return pl.BlockSpec(shape, index_map,
                                    pipeline_mode=pl.Buffered(buffer_count=1))
            return pl.BlockSpec(shape, index_map)

        return pl.pallas_call(
            kernel,
            out_shape=jax.ShapeDtypeStruct((B, C_out, L), out_dtype),
            grid_spec=pltpu.PrefetchScalarGridSpec(
                num_scalar_prefetch=0,
                grid=grid,
                in_specs=[
                    # Activations: NCL read directly; time tile on the lane
                    # axis, batch dim squeezed out of the kernel view.
                    pl.BlockSpec((None, C_in, tl), lambda b, j: (b, 0, j)),
                    # Weights / biases: whole-array, grid-invariant blocks.
                    w_spec((H, C_in), lambda b, j: (0, 0)),
                    w_spec((H, 1), lambda b, j: (0, 0)),
                    w_spec((num_hidden_layers, H, H),
                           lambda b, j: (0, 0, 0)),
                    w_spec((num_hidden_layers, H, 1),
                           lambda b, j: (0, 0, 0)),
                    w_spec((C_out, H), lambda b, j: (0, 0)),
                    w_spec((C_out, 1), lambda b, j: (0, 0)),
                ],
                out_specs=pl.BlockSpec((None, C_out, tl),
                                       lambda b, j: (b, 0, j)),
            ),
            compiler_params=pltpu.CompilerParams(
                dimension_semantics=("parallel", "parallel"),
                vmem_limit_bytes=int(vmem_limit_bytes),
            ),
        )(z_ncl, w_in, b_in, w_h, b_h, w_out, b_out)

    if single_buffer_weights and hasattr(pl, "Buffered"):
        try:
            return _call(True)
        except Exception:
            # pipeline_mode=pl.Buffered(1) unsupported on this JAX/Mosaic
            # version: fall back to default double-buffering (correct, just
            # slightly more VMEM).
            pass
    return _call(False)


def init_params(key, input_dim, output_dim, hidden_dim, num_hidden_layers):
    """Conv1d(kernel=1)-shaped params: weights (out_ch, in_ch), biases (out_ch, 1)."""
    ks = jax.random.split(key, 6)

    def uniform(k, shape, fan_in):
        bound = 1.0 / (fan_in ** 0.5)
        return jax.random.uniform(k, shape, jnp.float32, -bound, bound)

    w_in = uniform(ks[0], (hidden_dim, input_dim), input_dim)
    b_in = uniform(ks[1], (hidden_dim, 1), input_dim)
    w_h = uniform(ks[2], (num_hidden_layers, hidden_dim, hidden_dim), hidden_dim)
    b_h = uniform(ks[3], (num_hidden_layers, hidden_dim, 1), hidden_dim)
    w_out = uniform(ks[4], (output_dim, hidden_dim), hidden_dim)
    b_out = uniform(ks[5], (output_dim, 1), hidden_dim)
    return (w_in, b_in, w_h, b_h, w_out, b_out)


def reference_forward(z_ncl, params):
    """Pure-JAX f32 reference replicating the PyTorch forward exactly."""
    w_in, b_in, w_h, b_h, w_out, b_out = params
    h = jnp.tanh(jnp.einsum("oc,bcl->bol", w_in, z_ncl) + b_in[None])
    for l in range(w_h.shape[0]):
        h = jnp.tanh(jnp.einsum("oc,bcl->bol", w_h[l], h) + b_h[l][None])
    return jnp.exp(jnp.einsum("oc,bcl->bol", w_out, h) + b_out[None])


if __name__ == "__main__":
    # Small shapes consistent with the module: batch=2, input_dim=4, seq=16,
    # hidden_dim=32, output_dim=4, num_hidden_layers=2.
    B, INPUT_DIM, SEQ = 2, 4, 16
    HIDDEN_DIM, OUTPUT_DIM, NUM_HIDDEN_LAYERS = 32, 4, 2

    key = jax.random.PRNGKey(0)
    kz, kp = jax.random.split(key)
    z = jax.random.normal(kz, (B, INPUT_DIM, SEQ), jnp.float32)
    params = init_params(kp, INPUT_DIM, OUTPUT_DIM, HIDDEN_DIM,
                         NUM_HIDDEN_LAYERS)

    x_ref = reference_forward(z, params)

    # Exact-match f32 path.
    x_f32 = jax.block_until_ready(
        generative_model_forward(z, params, compute_dtype=jnp.float32))
    assert x_f32.shape == (B, OUTPUT_DIM, SEQ)
    assert jnp.allclose(x_f32, x_ref, atol=1e-5, rtol=1e-5), \
        "f32 kernel mismatch vs reference"

    # Default path: bf16 MXU operands, f32 accumulation / biases; looser tol.
    x_hat = jax.block_until_ready(generative_model_forward(z, params))
    assert x_hat.shape == (B, OUTPUT_DIM, SEQ)
    assert jnp.allclose(x_hat, x_ref, atol=1e-1, rtol=1e-1), \
        "bf16 kernel mismatch vs reference"

    print("KERNEL_OK")
</pallas_src>

<mosaic_0001>
module attributes {stable_mosaic.version = 11 : i64} {
  func.func @_mlp_kernel(%arg0: i32, %arg1: i32, %arg2: memref<1x4x16xf32, #tpu.memory_space<vmem>>, %arg3: memref<32x4xf32, #tpu.memory_space<vmem>>, %arg4: memref<32x1xf32, #tpu.memory_space<vmem>>, %arg5: memref<2x32x32xf32, #tpu.memory_space<vmem>>, %arg6: memref<2x32x1xf32, #tpu.memory_space<vmem>>, %arg7: memref<4x32xf32, #tpu.memory_space<vmem>>, %arg8: memref<4x1xf32, #tpu.memory_space<vmem>>, %arg9: memref<1x4x16xf32, #tpu.memory_space<vmem>>) attributes {dimension_semantics = [#tpu.dimension_semantics<parallel>, #tpu.dimension_semantics<parallel>], iteration_bounds = array<i64: 2, 1>, scalar_prefetch = 0 : i64, scratch_operands = 0 : i64, tpu.core_type = #tpu.core_type<tc>, window_params = [{transform_indices = @transform_0, window_bounds = array<i64: 1, 4, 16>}, {pipeline_mode = #tpu.pipeline_mode<synchronous>, transform_indices = @transform_1, window_bounds = array<i64: 32, 4>}, {pipeline_mode = #tpu.pipeline_mode<synchronous>, transform_indices = @transform_2, window_bounds = array<i64: 32, 1>}, {pipeline_mode = #tpu.pipeline_mode<synchronous>, transform_indices = @transform_3, window_bounds = array<i64: 2, 32, 32>}, {pipeline_mode = #tpu.pipeline_mode<synchronous>, transform_indices = @transform_4, window_bounds = array<i64: 2, 32, 1>}, {pipeline_mode = #tpu.pipeline_mode<synchronous>, transform_indices = @transform_5, window_bounds = array<i64: 4, 32>}, {pipeline_mode = #tpu.pipeline_mode<synchronous>, transform_indices = @transform_6, window_bounds = array<i64: 4, 1>}, {transform_indices = @transform_7, window_bounds = array<i64: 1, 4, 16>}]} {
    %c0 = arith.constant 0 : index
    %c0_0 = arith.constant 0 : index
    %0 = vector.load %arg3[%c0, %c0_0] : memref<32x4xf32, #tpu.memory_space<vmem>>, vector<32x4xf32>
    %c0_1 = arith.constant 0 : index
    %c0_2 = arith.constant 0 : index
    %c0_3 = arith.constant 0 : index
    %1 = vector.load %arg2[%c0_1, %c0_2, %c0_3] : memref<1x4x16xf32, #tpu.memory_space<vmem>>, vector<1x4x16xf32>
    %2 = vector.shape_cast %1 : vector<1x4x16xf32> to vector<4x16xf32>
    %cst = arith.constant dense<0.000000e+00> : vector<32x16xf32>
    %3 = tpu.matmul %0, %2, %cst {dimension_numbers = #tpu.dot_dimension_numbers<[1], [0], [0], [1], [0, 0, 1, 1], [], []>} : vector<32x4xf32>, vector<4x16xf32>, vector<32x16xf32> -> vector<32x16xf32>
    %c0_4 = arith.constant 0 : index
    %c0_5 = arith.constant 0 : index
    %4 = vector.load %arg4[%c0_4, %c0_5] : memref<32x1xf32, #tpu.memory_space<vmem>>, vector<32x1xf32>
    %5 = vector.broadcast %4 : vector<32x1xf32> to vector<32x16xf32>
    %6 = arith.addf %3, %5 : vector<32x16xf32>
    %7 = math.tanh %6 : vector<32x16xf32>
    %c0_6 = arith.constant 0 : index
    %c0_7 = arith.constant 0 : index
    %c0_8 = arith.constant 0 : index
    %8 = vector.load %arg6[%c0_6, %c0_7, %c0_8] : memref<2x32x1xf32, #tpu.memory_space<vmem>>, vector<2x32x1xf32>
    %c0_9 = arith.constant 0 : index
    %c0_10 = arith.constant 0 : index
    %c0_11 = arith.constant 0 : index
    %9 = vector.load %arg5[%c0_9, %c0_10, %c0_11] : memref<2x32x32xf32, #tpu.memory_space<vmem>>, vector<1x32x32xf32>
    %10 = vector.shape_cast %9 : vector<1x32x32xf32> to vector<32x32xf32>
    %cst_12 = arith.constant dense<0.000000e+00> : vector<32x16xf32>
    %11 = tpu.matmul %10, %7, %cst_12 {dimension_numbers = #tpu.dot_dimension_numbers<[1], [0], [0], [1], [0, 0, 1, 1], [], []>} : vector<32x32xf32>, vector<32x16xf32>, vector<32x16xf32> -> vector<32x16xf32>
    %12 = vector.extract_strided_slice %8 {offsets = [0, 0, 0], sizes = [1, 32, 1], strides = [1, 1, 1]} : vector<2x32x1xf32> to vector<1x32x1xf32>
    %13 = vector.shape_cast %12 : vector<1x32x1xf32> to vector<32x1xf32>
    %14 = vector.broadcast %13 : vector<32x1xf32> to vector<32x16xf32>
    %15 = arith.addf %11, %14 : vector<32x16xf32>
    %16 = math.tanh %15 : vector<32x16xf32>
    %c1 = arith.constant 1 : index
    %c0_13 = arith.constant 0 : index
    %c0_14 = arith.constant 0 : index
    %17 = vector.load %arg5[%c1, %c0_13, %c0_14] : memref<2x32x32xf32, #tpu.memory_space<vmem>>, vector<1x32x32xf32>
    %18 = vector.shape_cast %17 : vector<1x32x32xf32> to vector<32x32xf32>
    %cst_15 = arith.constant dense<0.000000e+00> : vector<32x16xf32>
    %19 = tpu.matmul %18, %16, %cst_15 {dimension_numbers = #tpu.dot_dimension_numbers<[1], [0], [0], [1], [0, 0, 1, 1], [], []>} : vector<32x32xf32>, vector<32x16xf32>, vector<32x16xf32> -> vector<32x16xf32>
    %20 = vector.extract_strided_slice %8 {offsets = [1, 0, 0], sizes = [1, 32, 1], strides = [1, 1, 1]} : vector<2x32x1xf32> to vector<1x32x1xf32>
    %21 = vector.shape_cast %20 : vector<1x32x1xf32> to vector<32x1xf32>
    %22 = vector.broadcast %21 : vector<32x1xf32> to vector<32x16xf32>
    %23 = arith.addf %19, %22 : vector<32x16xf32>
    %24 = math.tanh %23 : vector<32x16xf32>
    %c0_16 = arith.constant 0 : index
    %c0_17 = arith.constant 0 : index
    %25 = vector.load %arg7[%c0_16, %c0_17] : memref<4x32xf32, #tpu.memory_space<vmem>>, vector<4x32xf32>
    %cst_18 = arith.constant dense<0.000000e+00> : vector<4x16xf32>
    %26 = tpu.matmul %25, %24, %cst_18 {dimension_numbers = #tpu.dot_dimension_numbers<[1], [0], [0], [1], [0, 0, 1, 1], [], []>} : vector<4x32xf32>, vector<32x16xf32>, vector<4x16xf32> -> vector<4x16xf32>
    %c0_19 = arith.constant 0 : index
    %c0_20 = arith.constant 0 : index
    %27 = vector.load %arg8[%c0_19, %c0_20] : memref<4x1xf32, #tpu.memory_space<vmem>>, vector<4x1xf32>
    %28 = vector.broadcast %27 : vector<4x1xf32> to vector<4x16xf32>
    %29 = arith.addf %26, %28 : vector<4x16xf32>
    %30 = math.exp %29 : vector<4x16xf32>
    %c0_21 = arith.constant 0 : index
    %c0_22 = arith.constant 0 : index
    %c0_23 = arith.constant 0 : index
    %31 = vector.load %arg9[%c0_21, %c0_22, %c0_23] : memref<1x4x16xf32, #tpu.memory_space<vmem>>, vector<1x4x16xf32>
    %32 = vector.shape_cast %31 : vector<1x4x16xf32> to vector<4x16xf32>
    %33 = vector.shape_cast %30 : vector<4x16xf32> to vector<1x4x16xf32>
    tpu.vector_store %arg9[%c0_21, %c0_22, %c0_23], %33 {strides = array<i32>} : memref<1x4x16xf32, #tpu.memory_space<vmem>>, vector<1x4x16xf32>,
    return
  }
  func.func @transform_0(%arg0: i32, %arg1: i32) -> (i32, i32, i32) {
    %c0_i32 = arith.constant 0 : i32
    %c0_i32_0 = arith.constant 0 : i32
    return %arg0, %c0_i32, %arg1 : i32, i32, i32
  }
  func.func @transform_1(%arg0: i32, %arg1: i32) -> (i32, i32) {
    %c0_i32 = arith.constant 0 : i32
    %c0_i32_0 = arith.constant 0 : i32
    %c0_i32_1 = arith.constant 0 : i32
    return %c0_i32, %c0_i32_0 : i32, i32
  }
  func.func @transform_2(%arg0: i32, %arg1: i32) -> (i32, i32) {
    %c0_i32 = arith.constant 0 : i32
    %c0_i32_0 = arith.constant 0 : i32
    %c0_i32_1 = arith.constant 0 : i32
    return %c0_i32, %c0_i32_0 : i32, i32
  }
  func.func @transform_3(%arg0: i32, %arg1: i32) -> (i32, i32, i32) {
    %c0_i32 = arith.constant 0 : i32
    %c0_i32_0 = arith.constant 0 : i32
    %c0_i32_1 = arith.constant 0 : i32
    %c0_i32_2 = arith.constant 0 : i32
    return %c0_i32, %c0_i32_0, %c0_i32_1 : i32, i32, i32
  }
  func.func @transform_4(%arg0: i32, %arg1: i32) -> (i32, i32, i32) {
    %c0_i32 = arith.constant 0 : i32
    %c0_i32_0 = arith.constant 0 : i32
    %c0_i32_1 = arith.constant 0 : i32
    %c0_i32_2 = arith.constant 0 : i32
    return %c0_i32, %c0_i32_0, %c0_i32_1 : i32, i32, i32
  }
  func.func @transform_5(%arg0: i32, %arg1: i32) -> (i32, i32) {
    %c0_i32 = arith.constant 0 : i32
    %c0_i32_0 = arith.constant 0 : i32
    %c0_i32_1 = arith.constant 0 : i32
    return %c0_i32, %c0_i32_0 : i32, i32
  }
  func.func @transform_6(%arg0: i32, %arg1: i32) -> (i32, i32) {
    %c0_i32 = arith.constant 0 : i32
    %c0_i32_0 = arith.constant 0 : i32
    %c0_i32_1 = arith.constant 0 : i32
    return %c0_i32, %c0_i32_0 : i32, i32
  }
  func.func @transform_7(%arg0: i32, %arg1: i32) -> (i32, i32, i32) {
    %c0_i32 = arith.constant 0 : i32
    %c0_i32_0 = arith.constant 0 : i32
    return %arg0, %c0_i32, %arg1 : i32, i32, i32
  }
}

module attributes {stable_mosaic.version = 11 : i64} {
  func.func @_mlp_kernel(%arg0: i32, %arg1: i32, %arg2: memref<1x4x16xf32, #tpu.memory_space<vmem>>, %arg3: memref<32x4xf32, #tpu.memory_space<vmem>>, %arg4: memref<32x1xf32, #tpu.memory_space<vmem>>, %arg5: memref<2x32x32xf32, #tpu.memory_space<vmem>>, %arg6: memref<2x32x1xf32, #tpu.memory_space<vmem>>, %arg7: memref<4x32xf32, #tpu.memory_space<vmem>>, %arg8: memref<4x1xf32, #tpu.memory_space<vmem>>, %arg9: memref<1x4x16xf32, #tpu.memory_space<vmem>>) attributes {dimension_semantics = [#tpu.dimension_semantics<parallel>, #tpu.dimension_semantics<parallel>], iteration_bounds = array<i64: 2, 1>, scalar_prefetch = 0 : i64, scratch_operands = 0 : i64, tpu.core_type = #tpu.core_type<tc>, window_params = [{transform_indices = @transform_0, window_bounds = array<i64: 1, 4, 16>}, {pipeline_mode = #tpu.pipeline_mode<synchronous>, transform_indices = @transform_1, window_bounds = array<i64: 32, 4>}, {pipeline_mode = #tpu.pipeline_mode<synchronous>, transform_indices = @transform_2, window_bounds = array<i64: 32, 1>}, {pipeline_mode = #tpu.pipeline_mode<synchronous>, transform_indices = @transform_3, window_bounds = array<i64: 2, 32, 32>}, {pipeline_mode = #tpu.pipeline_mode<synchronous>, transform_indices = @transform_4, window_bounds = array<i64: 2, 32, 1>}, {pipeline_mode = #tpu.pipeline_mode<synchronous>, transform_indices = @transform_5, window_bounds = array<i64: 4, 32>}, {pipeline_mode = #tpu.pipeline_mode<synchronous>, transform_indices = @transform_6, window_bounds = array<i64: 4, 1>}, {transform_indices = @transform_7, window_bounds = array<i64: 1, 4, 16>}]} {
    %c0 = arith.constant 0 : index
    %c0_0 = arith.constant 0 : index
    %0 = vector.load %arg3[%c0, %c0_0] : memref<32x4xf32, #tpu.memory_space<vmem>>, vector<32x4xf32>
    %c0_1 = arith.constant 0 : index
    %c0_2 = arith.constant 0 : index
    %c0_3 = arith.constant 0 : index
    %1 = vector.load %arg2[%c0_1, %c0_2, %c0_3] : memref<1x4x16xf32, #tpu.memory_space<vmem>>, vector<1x4x16xf32>
    %2 = vector.shape_cast %1 : vector<1x4x16xf32> to vector<4x16xf32>
    %cst = arith.constant dense<0.000000e+00> : vector<32x16xf32>
    %3 = tpu.matmul %0, %2, %cst {dimension_numbers = #tpu.dot_dimension_numbers<[1], [0], [0], [1], [0, 0, 1, 1], [], []>} : vector<32x4xf32>, vector<4x16xf32>, vector<32x16xf32> -> vector<32x16xf32>
    %c0_4 = arith.constant 0 : index
    %c0_5 = arith.constant 0 : index
    %4 = vector.load %arg4[%c0_4, %c0_5] : memref<32x1xf32, #tpu.memory_space<vmem>>, vector<32x1xf32>
    %5 = vector.broadcast %4 : vector<32x1xf32> to vector<32x16xf32>
    %6 = arith.addf %3, %5 : vector<32x16xf32>
    %7 = math.tanh %6 : vector<32x16xf32>
    %c0_6 = arith.constant 0 : index
    %c0_7 = arith.constant 0 : index
    %c0_8 = arith.constant 0 : index
    %8 = vector.load %arg6[%c0_6, %c0_7, %c0_8] : memref<2x32x1xf32, #tpu.memory_space<vmem>>, vector<2x32x1xf32>
    %c0_9 = arith.constant 0 : index
    %c0_10 = arith.constant 0 : index
    %c0_11 = arith.constant 0 : index
    %9 = vector.load %arg5[%c0_9, %c0_10, %c0_11] : memref<2x32x32xf32, #tpu.memory_space<vmem>>, vector<1x32x32xf32>
    %10 = vector.shape_cast %9 : vector<1x32x32xf32> to vector<32x32xf32>
    %cst_12 = arith.constant dense<0.000000e+00> : vector<32x16xf32>
    %11 = tpu.matmul %10, %7, %cst_12 {dimension_numbers = #tpu.dot_dimension_numbers<[1], [0], [0], [1], [0, 0, 1, 1], [], []>} : vector<32x32xf32>, vector<32x16xf32>, vector<32x16xf32> -> vector<32x16xf32>
    %12 = vector.extract_strided_slice %8 {offsets = [0, 0, 0], sizes = [1, 32, 1], strides = [1, 1, 1]} : vector<2x32x1xf32> to vector<1x32x1xf32>
    %13 = vector.shape_cast %12 : vector<1x32x1xf32> to vector<32x1xf32>
    %14 = vector.broadcast %13 : vector<32x1xf32> to vector<32x16xf32>
    %15 = arith.addf %11, %14 : vector<32x16xf32>
    %16 = math.tanh %15 : vector<32x16xf32>
    %c1 = arith.constant 1 : index
    %c0_13 = arith.constant 0 : index
    %c0_14 = arith.constant 0 : index
    %17 = vector.load %arg5[%c1, %c0_13, %c0_14] : memref<2x32x32xf32, #tpu.memory_space<vmem>>, vector<1x32x32xf32>
    %18 = vector.shape_cast %17 : vector<1x32x32xf32> to vector<32x32xf32>
    %cst_15 = arith.constant dense<0.000000e+00> : vector<32x16xf32>
    %19 = tpu.matmul %18, %16, %cst_15 {dimension_numbers = #tpu.dot_dimension_numbers<[1], [0], [0], [1], [0, 0, 1, 1], [], []>} : vector<32x32xf32>, vector<32x16xf32>, vector<32x16xf32> -> vector<32x16xf32>
    %20 = vector.extract_strided_slice %8 {offsets = [1, 0, 0], sizes = [1, 32, 1], strides = [1, 1, 1]} : vector<2x32x1xf32> to vector<1x32x1xf32>
    %21 = vector.shape_cast %20 : vector<1x32x1xf32> to vector<32x1xf32>
    %22 = vector.broadcast %21 : vector<32x1xf32> to vector<32x16xf32>
    %23 = arith.addf %19, %22 : vector<32x16xf32>
    %24 = math.tanh %23 : vector<32x16xf32>
    %c0_16 = arith.constant 0 : index
    %c0_17 = arith.constant 0 : index
    %25 = vector.load %arg7[%c0_16, %c0_17] : memref<4x32xf32, #tpu.memory_space<vmem>>, vector<4x32xf32>
    %cst_18 = arith.constant dense<0.000000e+00> : vector<4x16xf32>
    %26 = tpu.matmul %25, %24, %cst_18 {dimension_numbers = #tpu.dot_dimension_numbers<[1], [0], [0], [1], [0, 0, 1, 1], [], []>} : vector<4x32xf32>, vector<32x16xf32>, vector<4x16xf32> -> vector<4x16xf32>
    %c0_19 = arith.constant 0 : index
    %c0_20 = arith.constant 0 : index
    %27 = vector.load %arg8[%c0_19, %c0_20] : memref<4x1xf32, #tpu.memory_space<vmem>>, vector<4x1xf32>
    %28 = vector.broadcast %27 : vector<4x1xf32> to vector<4x16xf32>
    %29 = arith.addf %26, %28 : vector<4x16xf32>
    %30 = math.exp %29 : vector<4x16xf32>
    %c0_21 = arith.constant 0 : index
    %c0_22 = arith.constant 0 : index
    %c0_23 = arith.constant 0 : index
    %31 = vector.load %arg9[%c0_21, %c0_22, %c0_23] : memref<1x4x16xf32, #tpu.memory_space<vmem>>, vector<1x4x16xf32>
    %32 = vector.shape_cast %31 : vector<1x4x16xf32> to vector<4x16xf32>
    %33 = vector.shape_cast %30 : vector<4x16xf32> to vector<1x4x16xf32>
    tpu.vector_store %arg9[%c0_21, %c0_22, %c0_23], %33 {strides = array<i32>} : memref<1x4x16xf32, #tpu.memory_space<vmem>>, vector<1x4x16xf32>,
    return
  }
  func.func @transform_0(%arg0: i32, %arg1: i32) -> (i32, i32, i32) {
    %c0_i32 = arith.constant 0 : i32
    %c0_i32_0 = arith.constant 0 : i32
    return %arg0, %c0_i32, %arg1 : i32, i32, i32
  }
  func.func @transform_1(%arg0: i32, %arg1: i32) -> (i32, i32) {
    %c0_i32 = arith.constant 0 : i32
    %c0_i32_0 = arith.constant 0 : i32
    %c0_i32_1 = arith.constant 0 : i32
    return %c0_i32, %c0_i32_0 : i32, i32
  }
  func.func @transform_2(%arg0: i32, %arg1: i32) -> (i32, i32) {
    %c0_i32 = arith.constant 0 : i32
    %c0_i32_0 = arith.constant 0 : i32
    %c0_i32_1 = arith.constant 0 : i32
    return %c0_i32, %c0_i32_0 : i32, i32
  }
  func.func @transform_3(%arg0: i32, %arg1: i32) -> (i32, i32, i32) {
    %c0_i32 = arith.constant 0 : i32
    %c0_i32_0 = arith.constant 0 : i32
    %c0_i32_1 = arith.constant 0 : i32
    %c0_i32_2 = arith.constant 0 : i32
    return %c0_i32, %c0_i32_0, %c0_i32_1 : i32, i32, i32
  }
  func.func @transform_4(%arg0: i32, %arg1: i32) -> (i32, i32, i32) {
    %c0_i32 = arith.constant 0 : i32
    %c0_i32_0 = arith.constant 0 : i32
    %c0_i32_1 = arith.constant 0 : i32
    %c0_i32_2 = arith.constant 0 : i32
    return %c0_i32, %c0_i32_0, %c0_i32_1 : i32, i32, i32
  }
  func.func @transform_5(%arg0: i32, %arg1: i32) -> (i32, i32) {
    %c0_i32 = arith.constant 0 : i32
    %c0_i32_0 = arith.constant 0 : i32
    %c0_i32_1 = arith.constant 0 : i32
    return %c0_i32, %c0_i32_0 : i32, i32
  }
  func.func @transform_6(%arg0: i32, %arg1: i32) -> (i32, i32) {
    %c0_i32 = arith.constant 0 : i32
    %c0_i32_0 = arith.constant 0 : i32
    %c0_i32_1 = arith.constant 0 : i32
    return %c0_i32, %c0_i32_0 : i32, i32
  }
  func.func @transform_7(%arg0: i32, %arg1: i32) -> (i32, i32, i32) {
    %c0_i32 = arith.constant 0 : i32
    %c0_i32_0 = arith.constant 0 : i32
    return %arg0, %c0_i32, %arg1 : i32, i32, i32
  }
}

</mosaic_0001>

<bundles_post_ra>
// kernel: tpu_custom_call.1
= control target key start
LH: loop header
LB: loop body
LE: loop exit
PB: predicated region body
PF: predicated region fallthrough
CT: control target
= control target key end

     0   :  { %12 = vsyncpa [#allocation3], 0  ;;  %s1403_s0 = inlined_call_operand.vmem [shape: f32[2,4,16], index: 0, kind: input, shape index: {}]   ;;  %s1404_s1 = inlined_call_operand.vmem [shape: f32[32,4], index: 1, kind: input, shape index: {}]   ;;  %s1405_s2 = inlined_call_operand.vmem [shape: f32[32,1], index: 2, kind: input, shape index: {}]   ;;  %s1406_s3 = inlined_call_operand.vmem [shape: f32[2,32,32], index: 3, kind: input, shape index: {}]   ;;  %s1407_s4 = inlined_call_operand.vmem [shape: f32[2,32,1], index: 4, kind: input, shape index: {}]   ;;  %s1408_s5 = inlined_call_operand.vmem [shape: f32[4,32], index: 5, kind: input, shape index: {}]   ;;  %s1409_s6 = inlined_call_operand.vmem [shape: f32[4,1], index: 6, kind: input, shape index: {}]   ;;  %s1410_s7 = inlined_call_operand.hbm [shape: f32[2,4,16], index: 7, kind: output, shape index: {}]  }
   0x1   :  { %14 = vsyncpa [#allocation3 + $0x1], 0  ;;  %s1200_s24 = smov 0   ;;  %s1202_s25 = smov 0  }
   0x2   :  { %s1204_s26 = smov 0   ;;  %s1206_s27 = smov 0  }
   0x3   :  { %s1208_s28 = smov 0   ;;  %s1210_s29 = smov 0  }
   0x4 LB: > { %s864_s30 = sadd.s32 4294967295, %s1153_s29   ;;  %s865_s8 = sadd.s32 4294967294, %s1153_s29   ;;  %s1153_s29 = sphi %s1210_s29, %s20_s29   ;;  %s1149_s28 = sphi %s1208_s28, %s1417_s28   ;;  %s1145_s27 = sphi %s1206_s27, %s1416_s27   ;;  %s1141_s26 = sphi %s1204_s26, %s1415_s26   ;;  %s1137_s25 = sphi %s1202_s25, %s1414_s25   ;;  %s1133_s24 = sphi %s1200_s24, %s1413_s24  }
   0x5   : > { %s32_s9 = sadd.s32 1, %s1149_s28  ;;  %s195_s10 = sadd.s32 1, %s1141_s26 }
   0x6   : > { %p34_p0 = scmp.ge.s32.totalorder %s32_s9, 2  ;;  %p205_p1 = scmp.ne.s32.totalorder %s1141_s26, %s1137_s25 }
   0x7   : > { %p206_p2 = scmp.eq.s32.totalorder %s864_s30, 1  ;;  %p211_p3 = scmp.ne.s32.totalorder %s1137_s25, %s1133_s24 }
   0x8   : > { %s1419_s9 = smov (%p34_p0, %s32_s9), 0  ;;  %p212_p5 = scmp.eq.s32.totalorder %s865_s8, 1 }
   0x9   : > { %p1240_p4 = por %p206_p2, %p205_p1  ;;  %s190_s12 = ssub.s32 %s1149_s28, %s1419_s9 }
   0xa   : > { %p868_p6 = scmp.ge.s32.totalorder %s1153_s29, 1  ;;  %p193_p7 = scmp.eq.s32.totalorder %s190_s12, 0 }
   0xb   : > { %p1247_p8 = por %p212_p5, %p211_p3  ;;  %p258_p9 = scmp.lt.s32.totalorder %s1153_s29, 3 }
   0xc   : > { %s1253_s14 = scalar_select %p193_p7, %s1141_s26, %s195_s10  }
   0xd   : > { %p259_p10 = pnand %p868_p6, %p258_p9 }
   0xe   : > { %p292_p11 = scmp.lt.s32.totalorder (!%p259_p10), %s1145_s27, 1  ;;  %v299_v0 = vld [vmem:[%s1404_s1] sm:$0xff] (!%p259_p10)  ;;  %vm328_vm0 = vcmask (!%p259_p10), 31744   ;;  %v1155_v2 = vmov (!%p259_p10), 0   ;;  %v306_v3 = vld [vmem:[%s1405_s2 + $0x10] sm:$0xff] (!%p259_p10)  ;;  %vm341_vm1 = vcmask (!%p259_p10), 1043456  }
   0xf   : > { %262 = sbr.rel (%p259_p10) target bundleno = 977 (0x3d1), region = 48  ;;  %921 = vmatprep.mubr.msk.f32.mxu0 (!%p259_p10), %vm328_vm0, %v299_v0  ;;  %v304_v1 = vld [vmem:[%s1405_s2] sm:$0xff] (!%p259_p10)  ;;  %1047 = vset.pattern.permute.xlu0 (!%p259_p10), %v1155_v2  ;;  %v305_v4 = vld [vmem:[%s1405_s2 + $0x8] sm:$0xff] (!%p259_p10)  ;;  %v307_v5 = vld [vmem:[%s1405_s2 + $0x18] sm:$0xff] (!%p259_p10)  ;;  %vm466_vm2 = vcmask (!%p259_p10), 261120   ;;  %v1156_v63 = vmov (!%p259_p10), 0.0|0.0  }
  0x10   : > { %1048 = vset.pattern.permute.xlu1 (!%p259_p10), %v1155_v2  ;;  %310 = vperm.xlu0 (!%p259_p10), %1047, %v304_v1   ;;  %v300_v7 = vld [vmem:[%s1404_s1 + $0x8] sm:$0xff] (!%p259_p10)  ;;  %v301_v8 = vld [vmem:[%s1404_s1 + $0x10] sm:$0xff] (!%p259_p10)  ;;  %v434_v9 = vld [vmem:[%s1407_s4] sm:$0xff] (!%p259_p10)  ;;  %vm1157_vm3 = vmmov (!%p259_p10), 0   ;;  %v1158_v0 = vmov (!%p259_p10), 0.0   ;;  %s289_s20 = sand.u32 (!%p259_p10), 1, %s1137_s25  }
  0x11   : > { %320 = vperm.xlu1 (!%p259_p10), %1048, %v306_v3   ;;  %v435_v10 = vld [vmem:[%s1407_s4 + $0x8] sm:$0xff] (!%p259_p10)  ;;  %v302_v11 = vld [vmem:[%s1404_s1 + $0x18] sm:$0xff] (!%p259_p10)  ;;  %v436_v12 = vld [vmem:[%s1407_s4 + $0x10] sm:$0xff] (!%p259_p10)  ;;  %s869_s21 = sshll.u32 (!%p259_p10), %s289_s20, 2  ;;  %s890_s23 = sshll.u32 (!%p259_p10), %s1145_s27, 6  ;;  %vm776_vm4 = vcmask (!%p259_p10), 125952  }
  0x12   : > { %v437_v13 = vld [vmem:[%s1407_s4 + $0x18] sm:$0xff] (!%p259_p10)  ;;  %v438_v14 = vld [vmem:[%s1407_s4 + $0x20] sm:$0xff] (!%p259_p10)  ;;  %v439_v15 = vld [vmem:[%s1407_s4 + $0x28] sm:$0xff] (!%p259_p10)  ;;  %s779_s15 = scalar_lea.sflag (!%p259_p10), [#allocation3], %s289_s20 }
  0x13   : > { %v440_v16 = vld [vmem:[%s1407_s4 + $0x30] sm:$0xff] (!%p259_p10)  ;;  %v441_v17 = vld [vmem:[%s1407_s4 + $0x38] sm:$0xff] (!%p259_p10)  ;;  %v695_v18 = vld [vmem:[%s1409_s6] sm:$0xf] (!%p259_p10) }
  0x14   : > { %315 = vperm.xlu0 (!%p259_p10), %1047, %v305_v4   ;;  %v442_v19 = vld [vmem:[%s1406_s3] sm:$0xff] (!%p259_p10)  ;;  %v443_v38 = vld [vmem:[%s1406_s3 + $0x8] sm:$0xff] (!%p259_p10)  ;;  %v444_v39 = vld [vmem:[%s1406_s3 + $0x10] sm:$0xff] (!%p259_p10) }
  0x15   : > { %325 = vperm.xlu1 (!%p259_p10), %1048, %v307_v5   ;;  %935 = vmatprep.mubr.msk.f32.mxu1 (!%p259_p10), %vm466_vm2, %v442_v19  ;;  %v445_v40 = vld [vmem:[%s1406_s3 + $0x18] sm:$0xff] (!%p259_p10)  ;;  %v880_v41 = vld [vmem:[%s1406_s3 + $0x20] sm:$0xff] (!%p259_p10)  ;;  %v881_v60 = vld [vmem:[%s1406_s3 + $0x28] sm:$0xff] (!%p259_p10) }
  0x16   : > { %s293_s19 = scalar_select %p292_p11, %s1145_s27, 1  ;;  %v882_v61 = vld [vmem:[%s1406_s3 + $0x30] sm:$0xff]  ;;  %v883_v62 = vld [vmem:[%s1406_s3 + $0x38] sm:$0xff]  ;;  %v694_v19 = vld [vmem:[%s1408_s5] sm:$0xf] }
  0x17   : > { %s1159_s27 = smov [#allocation2]  }
  0x18   : > { %s870_s22 = sshll.u32 %s293_s19, 2  ;;  %448 = vperm.xlu0 %1047, %v434_v9   ;;  %s1079_s17 = sshll.u32 %s1159_s27, 4  ;;  %s1080_s17 = int_to_ptr.vmem [resolvable:$false] %s1079_s17 }
  0x19   : > { %s298_s12 = scalar_lea.vmem %s1403_s0, %s870_s22  ;;  %453 = vperm.xlu1 %1048, %v435_v10   ;;  %s291_s22 = scalar_lea.vmem [#allocation2], %s869_s21 }
  0x1a   : > { %v303_v6 = vld [vmem:[%s298_s12] sm:$0xf]  ;;  %s793_s30 = sshll.u32 %s291_s22, 4  ;;  %s1356_s12 = scalar_lea.hbm %s1410_s7, %s890_s23  ;;  %s1358_s30 = int_to_ptr.vmem [resolvable:$true] %s793_s30 }
  0x1b   : > { %919 = vmatprep.subr.msk.mxu0 %vm341_vm1, %v303_v6  ;;  %s1075_s16 = scalar_lea.vmem %s1358_s30, 64  ;;  %s1081_s18 = scalar_lea.vmem %s1080_s17, 128 }
  0x1c   : > { %920 = vmatpush3.msk.msra.mxu0 %vm341_vm1, %v303_v6  ;;  %458 = vperm.xlu0 %1047, %v436_v12   ;;  %p1076_p12 = scmp.ne.s32.totalorder %s1358_s30, %s1075_s16  ;;  %p1082_p1 = scmp.lt.s32.totalorder %s1358_s30, %s1080_s17 }
  0x1d   : > { %922 = vmatmul.mubr.msk.f32.vlgmr.msra.gmra.mrb[0].mxu0 %vm328_vm0, %v300_v7  ;;  %463 = vperm.xlu1 %1048, %v437_v13   ;;  %p1083_p2 = scmp.lt.s32.totalorder %s1081_s18, %s1075_s16 }
  0x1e   : > { %924 = vmatprep.mubr.msk.f32.mxu0 %vm328_vm0, %v301_v8  ;;  %p1077_p13 = pnand %p1076_p12, %p1240_p4 }
  0x1f   : > { %p1084_p3 = por %p1083_p2, %p1082_p1 }
  0x20   : > { %575 = vperm.xlu0 %1047, %v438_v14   ;;  %p1078_p0 = pneg %p1077_p13 }
  0x21   : > { %925 = vmatmul.mubr.msk.f32.gmra.mrb[2].mxu0 %vm328_vm0, %v302_v11  ;;  %580 = vperm.xlu1 %1048, %v439_v15  }
  0x22   : > { %949 = vmatprep.mubr.msk.f32.mxu0 %vm466_vm2, %v880_v41  ;;  %p1085_p5 = pnand %p1084_p3, %p1078_p0 }
  0x24   : > { %585 = vperm.xlu0 %1047, %v440_v16  }
  0x25   : > { %590 = vperm.xlu1 %1048, %v441_v17  }
  0x28   : > { %698 = vperm.xlu0 %1047, %v695_v18  }
  0x8f   : > { %v311_v20 = vpop.permute.xlu0 %310 }
  0x90   : > { %v321_v21 = vpop.permute.xlu1 %320 }
  0x93   : > { %v316_v22 = vpop.permute.xlu0 %315 }
  0x94   : > { %v326_v27 = vpop.permute.xlu1 %325 }
  0x97   : > { %v449_v43 = vpop.permute.xlu0 %448 }
  0x98   : > { %v454_v42 = vpop.permute.xlu1 %453 }
  0x9b   : > { %v459_v50 = vpop.permute.xlu0 %458 }
  0x9c   : > { %v464_v48 = vpop.permute.xlu1 %463 }
  0x9f   : > { %v576_v2 = vpop.permute.xlu0 %575 }
  0xa0   : > { %v581_v1 = vpop.permute.xlu1 %580 }
  0xa3   : > { %v586_v9 = vpop.permute.xlu0 %585 }
  0xa4   : > { %v591_v7 = vpop.permute.xlu1 %590 }
  0xf0   : > { %v923_v23 = vpop.f32.mrb[0].mxu0 }
  0xf1   : > { %v417_v24 = vadd.f32 %v923_v23, %v316_v22  ;;  %v411_v25 = vpop.f32.mrb[1].mxu0 }
  0xf2   : > { %v412_v26 = vadd.f32 %v411_v25, %v311_v20  ;;  %v699_v20 = vpop.permute.xlu0 %698 }
  0xf3   : > { %1049 = vtanh.f32 %v417_v24 }
  0xf4   : > { %1051 = vtanh.f32 %v412_v26  ;;  %v926_v28 = vpop.f32.mrb[2].mxu0 }
  0xf5   : > { %v427_v29 = vadd.f32 %v926_v28, %v326_v27  ;;  %v421_v30 = vpop.f32.mrb[3].mxu0 }
  0xf6   : > { %v422_v31 = vadd.f32 %v421_v30, %v321_v21 }
  0xf7   : > { %1053 = vtanh.f32 %v427_v29 }
  0xf8   : > { %1055 = vtanh.f32 %v422_v31 }
  0xfd   : > { %v1050_v32 = vpop.eup %1049 }
  0xfe   : > { %v1052_v33 = vpop.eup %1051 }
  0xff   : > { %v966_v34 = vpack.c.bf16 %v1050_v32, %v1052_v33 }
 0x101   : > { %v1054_v35 = vpop.eup %1053  ;;  %967 = vmatprep.subr.bf16.mxu1 %v966_v34 }
 0x102   : > { %v1056_v36 = vpop.eup %1055  ;;  %969 = vmatpush3.bf16.msra.mxu1 %v966_v34 }
 0x103   : > { %v970_v37 = vpack.c.bf16 %v1054_v35, %v1056_v36 }
 0x105   : > { %971 = vmatprep.subr.bf16.mxu1 %v970_v37 }
 0x106   : > { %973 = vmatpush3.bf16.msra.mxu1 %v970_v37 }
 0x107   : > { %982 = vmatprep.subr.bf16.mxu1 %v1156_v63 }
 0x109   : > { %936 = vmatmul.mubr.msk.f32.vlgmr.msra.gmra.mrb[0].mxu1 %vm466_vm2, %v443_v38 }
 0x10a   : > { %938 = vmatprep.mubr.msk.f32.mxu1 %vm466_vm2, %v444_v39 }
 0x10d   : > { %939 = vmatmul.mubr.msk.f32.gmra.mrb[2].mxu1 %vm466_vm2, %v445_v40 }
 0x10e   : > { %963 = vmatprep.mubr.msk.f32.mxu1 %vm1157_vm3, %v1158_v0 }
 0x1dc   : > { %v937_v44 = vpop.f32.mrb[0].mxu1 }
 0x1dd   : > { %v551_v45 = vadd.f32 %v937_v44, %v454_v42  ;;  %v545_v46 = vpop.f32.mrb[1].mxu1 }
 0x1de   : > { %v546_v47 = vadd.f32 %v545_v46, %v449_v43 }
 0x1df   : > { %1057 = vtanh.f32 %v551_v45 }
 0x1e0   : > { %1059 = vtanh.f32 %v546_v47  ;;  %v940_v49 = vpop.f32.mrb[2].mxu1 }
 0x1e1   : > { %v561_v51 = vadd.f32 %v940_v49, %v464_v48  ;;  %v555_v52 = vpop.f32.mrb[3].mxu1 }
 0x1e2   : > { %v556_v53 = vadd.f32 %v555_v52, %v459_v50 }
 0x1e3   : > { %1061 = vtanh.f32 %v561_v51 }
 0x1e4   : > { %1063 = vtanh.f32 %v556_v53 }
 0x1e9   : > { %v1058_v54 = vpop.eup %1057 }
 0x1ea   : > { %v1060_v55 = vpop.eup %1059 }
 0x1eb   : > { %v974_v56 = vpack.c.bf16 %v1058_v54, %v1060_v55 }
 0x1ed   : > { %v1062_v57 = vpop.eup %1061  ;;  %975 = vmatprep.subr.bf16.mxu0 %v974_v56 }
 0x1ee   : > { %v1064_v58 = vpop.eup %1063  ;;  %977 = vmatpush3.bf16.msra.mxu0 %v974_v56 }
 0x1ef   : > { %v978_v59 = vpack.c.bf16 %v1062_v57, %v1064_v58 }
 0x1f1   : > { %979 = vmatprep.subr.bf16.mxu0 %v978_v59 }
 0x1f2   : > { %981 = vmatpush3.bf16.msra.mxu0 %v978_v59 }
 0x1f5   : > { %950 = vmatmul.mubr.msk.f32.vlgmr.msra.gmra.mrb[4].mxu0 %vm466_vm2, %v881_v60 }
 0x1f6   : > { %952 = vmatprep.mubr.msk.f32.mxu0 %vm466_vm2, %v882_v61 }
 0x1f9   : > { %953 = vmatmul.mubr.msk.f32.gmra.mrb[6].mxu0 %vm466_vm2, %v883_v62 }
 0x2c8   : > { %v951_v3 = vpop.f32.mrb[4].mxu0 }
 0x2c9   : > { %v677_v4 = vadd.f32 %v951_v3, %v581_v1  ;;  %v671_v5 = vpop.f32.mrb[5].mxu0 }
 0x2ca   : > { %v672_v6 = vadd.f32 %v671_v5, %v576_v2 }
 0x2cb   : > { %1065 = vtanh.f32 %v677_v4 }
 0x2cc   : > { %1067 = vtanh.f32 %v672_v6  ;;  %v954_v8 = vpop.f32.mrb[6].mxu0 }
 0x2cd   : > { %v687_v10 = vadd.f32 %v954_v8, %v591_v7  ;;  %v681_v11 = vpop.f32.mrb[7].mxu0 }
 0x2ce   : > { %v682_v12 = vadd.f32 %v681_v11, %v586_v9 }
 0x2cf   : > { %1069 = vtanh.f32 %v687_v10 }
 0x2d0   : > { %1071 = vtanh.f32 %v682_v12 }
 0x2d5   : > { %v1066_v13 = vpop.eup %1065 }
 0x2d6   : > { %v1068_v14 = vpop.eup %1067 }
 0x2d7   : > { %v983_v15 = vpack.c.bf16 %v1066_v13, %v1068_v14 }
 0x2d9   : > { %v1070_v16 = vpop.eup %1069  ;;  %984 = vmatpush3.bf16.msra.mxu1 %v983_v15 }
 0x2da   : > { %v1072_v17 = vpop.eup %1071  ;;  %985 = vmatprep.subr.bf16.mxu1 %v1156_v63 }
 0x2db   : > { %v986_v18 = vpack.c.bf16 %v1070_v16, %v1072_v17 }
 0x2dd   : > { %987 = vmatpush3.bf16.msra.mxu1 %v986_v18 }
 0x2e0   : > { %964 = vmatmul.mubr.msk.f32.vlgmr.msra.gmra.mrb[4].mxu1 %vm466_vm2, %v694_v19 }
 0x3b3   : > { %v770_v21 = vpop.f32.mrb[4].mxu1 }
 0x3b4   : > { %v771_v22 = vadd.f32 %v770_v21, %v699_v20  ;;  %v965_v23 = vpop.f32.mrb[5].mxu1 }
 0x3b6   : > { %v774_v24 = vmul.f32 1.442695, %v771_v22 }
 0x3b8   : > { %1073 = vpow2.f32 %v774_v24 }
 0x3c2   : > { %v1074_v25 = vpop.eup %1073 }
 0x3c3   : > { %777 = vst.msk [vmem:[%s291_s22] sm:$0xf] %vm776_vm4, %v1074_v25 }
 0x3c4   : > { %1088 = shalt.err (!%p1085_p5)
}
 0x3c5   : > { %s1089_s19 = scalar_lea.hbm %s1356_s12, 64  ;;  %s1093_s23 = scalar_lea.hbm %s1410_s7, 128 }
 0x3c6   : > { %p1090_p6 = scmp.ne.s32.totalorder %s1356_s12, %s1089_s19  ;;  %p1094_p10 = scmp.lt.u32.totalorder %s1356_s12, %s1410_s7 }
 0x3c7   : > { %p1095_p11 = scmp.lt.u32.totalorder %s1093_s23, %s1089_s19  ;;  %p1097_p13 = scmp.lt.u32.totalorder %s1089_s19, %s1356_s12 }
 0x3c8   : > { %p1091_p7 = pnand %p1090_p6, %p1240_p4 }
 0x3c9   : > { %p1096_p12 = por %p1095_p11, %p1094_p10 }
 0x3ca   : > { %p1092_p9 = pneg %p1091_p7 }
 0x3cb   : > { %p1098_p0 = por %p1097_p13, %p1096_p12 }
 0x3cd   : > { %p1099_p1 = pnand %p1098_p0, %p1092_p9 }
 0x3cf   : > { %1102 = shalt.err (!%p1099_p1)
}
 0x3d0   : > { %988 = dma.vmem_to_hbm [thread:$0]  (%p1240_p4), %s1358_s30, 64, %s1356_s12, %s779_s15  }
 0x3d1 PF: > { %p994_p2 = scmp.ge.s32.totalorder %s1153_s29, 2  ;;  %s805_s10 = sand.u32 1, %s1133_s24  }
 0x3d2   : > { %s806_s16 = scalar_lea.sflag [#allocation3], %s805_s10 }
 0x3d3   : > { %p991_p3 = pnand %p994_p2, %p1247_p8 }
 0x3d5   : > { %1128 = dma.done.wait (!%p991_p3), %s806_s16, 64  }
 0x3d6   : > { %1130 = vsyncadd (!%p991_p3), %s806_s16, 4294967232  ;;  %s20_s29 = sadd.s32 1, %s1153_s29   ;;  %s1413_s24 = smov %s1137_s25 }
 0x3d7   : > { %p17_p5 = scmp.ge.s32.totalorder %s20_s29, 4   ;;  %s1414_s25 = smov %s1141_s26 }
 0x3d8   : > { %s1415_s26 = smov %s1253_s14  ;;  %s1416_s27 = smov %s1149_s28 }
 0x3d9   : > { %s1417_s28 = smov %s1419_s9  ;;  %19 = sbr.rel (!%p17_p5) target bundleno = 4 (0x4), region = 84 }
 0x3e0   :  { %811 = vsyncpa [#allocation3], 1 }
 0x3e1   :  { %813 = vsyncpa [#allocation3 + $0x1], 1 }

// kernel: tpu_custom_call.1
= control target key start
LH: loop header
LB: loop body
LE: loop exit
PB: predicated region body
PF: predicated region fallthrough
CT: control target
= control target key end

     0   :  { %12 = vsyncpa [#allocation3], 0  ;;  %s1403_s0 = inlined_call_operand.vmem [shape: f32[2,4,16], index: 0, kind: input, shape index: {}]   ;;  %s1404_s1 = inlined_call_operand.vmem [shape: f32[32,4], index: 1, kind: input, shape index: {}]   ;;  %s1405_s2 = inlined_call_operand.vmem [shape: f32[32,1], index: 2, kind: input, shape index: {}]   ;;  %s1406_s3 = inlined_call_operand.vmem [shape: f32[2,32,32], index: 3, kind: input, shape index: {}]   ;;  %s1407_s4 = inlined_call_operand.vmem [shape: f32[2,32,1], index: 4, kind: input, shape index: {}]   ;;  %s1408_s5 = inlined_call_operand.vmem [shape: f32[4,32], index: 5, kind: input, shape index: {}]   ;;  %s1409_s6 = inlined_call_operand.vmem [shape: f32[4,1], index: 6, kind: input, shape index: {}]   ;;  %s1410_s7 = inlined_call_operand.hbm [shape: f32[2,4,16], index: 7, kind: output, shape index: {}]  }
   0x1   :  { %14 = vsyncpa [#allocation3 + $0x1], 0  ;;  %s1200_s24 = smov 0   ;;  %s1202_s25 = smov 0  }
   0x2   :  { %s1204_s26 = smov 0   ;;  %s1206_s27 = smov 0  }
   0x3   :  { %s1208_s28 = smov 0   ;;  %s1210_s29 = smov 0  }
   0x4 LB: > { %s864_s30 = sadd.s32 4294967295, %s1153_s29   ;;  %s865_s8 = sadd.s32 4294967294, %s1153_s29   ;;  %s1153_s29 = sphi %s1210_s29, %s20_s29   ;;  %s1149_s28 = sphi %s1208_s28, %s1417_s28   ;;  %s1145_s27 = sphi %s1206_s27, %s1416_s27   ;;  %s1141_s26 = sphi %s1204_s26, %s1415_s26   ;;  %s1137_s25 = sphi %s1202_s25, %s1414_s25   ;;  %s1133_s24 = sphi %s1200_s24, %s1413_s24  }
   0x5   : > { %s32_s9 = sadd.s32 1, %s1149_s28  ;;  %s195_s10 = sadd.s32 1, %s1141_s26 }
   0x6   : > { %p34_p0 = scmp.ge.s32.totalorder %s32_s9, 2  ;;  %p205_p1 = scmp.ne.s32.totalorder %s1141_s26, %s1137_s25 }
   0x7   : > { %p206_p2 = scmp.eq.s32.totalorder %s864_s30, 1  ;;  %p211_p3 = scmp.ne.s32.totalorder %s1137_s25, %s1133_s24 }
   0x8   : > { %s1419_s9 = smov (%p34_p0, %s32_s9), 0  ;;  %p212_p5 = scmp.eq.s32.totalorder %s865_s8, 1 }
   0x9   : > { %p1240_p4 = por %p206_p2, %p205_p1  ;;  %s190_s12 = ssub.s32 %s1149_s28, %s1419_s9 }
   0xa   : > { %p868_p6 = scmp.ge.s32.totalorder %s1153_s29, 1  ;;  %p193_p7 = scmp.eq.s32.totalorder %s190_s12, 0 }
   0xb   : > { %p1247_p8 = por %p212_p5, %p211_p3  ;;  %p258_p9 = scmp.lt.s32.totalorder %s1153_s29, 3 }
   0xc   : > { %s1253_s14 = scalar_select %p193_p7, %s1141_s26, %s195_s10  }
   0xd   : > { %p259_p10 = pnand %p868_p6, %p258_p9 }
   0xe   : > { %p292_p11 = scmp.lt.s32.totalorder (!%p259_p10), %s1145_s27, 1  ;;  %v299_v0 = vld [vmem:[%s1404_s1] sm:$0xff] (!%p259_p10)  ;;  %vm328_vm0 = vcmask (!%p259_p10), 31744   ;;  %v1155_v2 = vmov (!%p259_p10), 0   ;;  %v306_v3 = vld [vmem:[%s1405_s2 + $0x10] sm:$0xff] (!%p259_p10)  ;;  %vm341_vm1 = vcmask (!%p259_p10), 1043456  }
   0xf   : > { %262 = sbr.rel (%p259_p10) target bundleno = 977 (0x3d1), region = 48  ;;  %921 = vmatprep.mubr.msk.f32.mxu0 (!%p259_p10), %vm328_vm0, %v299_v0  ;;  %v304_v1 = vld [vmem:[%s1405_s2] sm:$0xff] (!%p259_p10)  ;;  %1047 = vset.pattern.permute.xlu0 (!%p259_p10), %v1155_v2  ;;  %v305_v4 = vld [vmem:[%s1405_s2 + $0x8] sm:$0xff] (!%p259_p10)  ;;  %v307_v5 = vld [vmem:[%s1405_s2 + $0x18] sm:$0xff] (!%p259_p10)  ;;  %vm466_vm2 = vcmask (!%p259_p10), 261120   ;;  %v1156_v63 = vmov (!%p259_p10), 0.0|0.0  }
  0x10   : > { %1048 = vset.pattern.permute.xlu1 (!%p259_p10), %v1155_v2  ;;  %310 = vperm.xlu0 (!%p259_p10), %1047, %v304_v1   ;;  %v300_v7 = vld [vmem:[%s1404_s1 + $0x8] sm:$0xff] (!%p259_p10)  ;;  %v301_v8 = vld [vmem:[%s1404_s1 + $0x10] sm:$0xff] (!%p259_p10)  ;;  %v434_v9 = vld [vmem:[%s1407_s4] sm:$0xff] (!%p259_p10)  ;;  %vm1157_vm3 = vmmov (!%p259_p10), 0   ;;  %v1158_v0 = vmov (!%p259_p10), 0.0   ;;  %s289_s20 = sand.u32 (!%p259_p10), 1, %s1137_s25  }
  0x11   : > { %320 = vperm.xlu1 (!%p259_p10), %1048, %v306_v3   ;;  %v435_v10 = vld [vmem:[%s1407_s4 + $0x8] sm:$0xff] (!%p259_p10)  ;;  %v302_v11 = vld [vmem:[%s1404_s1 + $0x18] sm:$0xff] (!%p259_p10)  ;;  %v436_v12 = vld [vmem:[%s1407_s4 + $0x10] sm:$0xff] (!%p259_p10)  ;;  %s869_s21 = sshll.u32 (!%p259_p10), %s289_s20, 2  ;;  %s890_s23 = sshll.u32 (!%p259_p10), %s1145_s27, 6  ;;  %vm776_vm4 = vcmask (!%p259_p10), 125952  }
  0x12   : > { %v437_v13 = vld [vmem:[%s1407_s4 + $0x18] sm:$0xff] (!%p259_p10)  ;;  %v438_v14 = vld [vmem:[%s1407_s4 + $0x20] sm:$0xff] (!%p259_p10)  ;;  %v439_v15 = vld [vmem:[%s1407_s4 + $0x28] sm:$0xff] (!%p259_p10)  ;;  %s779_s15 = scalar_lea.sflag (!%p259_p10), [#allocation3], %s289_s20 }
  0x13   : > { %v440_v16 = vld [vmem:[%s1407_s4 + $0x30] sm:$0xff] (!%p259_p10)  ;;  %v441_v17 = vld [vmem:[%s1407_s4 + $0x38] sm:$0xff] (!%p259_p10)  ;;  %v695_v18 = vld [vmem:[%s1409_s6] sm:$0xf] (!%p259_p10) }
  0x14   : > { %315 = vperm.xlu0 (!%p259_p10), %1047, %v305_v4   ;;  %v442_v19 = vld [vmem:[%s1406_s3] sm:$0xff] (!%p259_p10)  ;;  %v443_v38 = vld [vmem:[%s1406_s3 + $0x8] sm:$0xff] (!%p259_p10)  ;;  %v444_v39 = vld [vmem:[%s1406_s3 + $0x10] sm:$0xff] (!%p259_p10) }
  0x15   : > { %325 = vperm.xlu1 (!%p259_p10), %1048, %v307_v5   ;;  %935 = vmatprep.mubr.msk.f32.mxu1 (!%p259_p10), %vm466_vm2, %v442_v19  ;;  %v445_v40 = vld [vmem:[%s1406_s3 + $0x18] sm:$0xff] (!%p259_p10)  ;;  %v880_v41 = vld [vmem:[%s1406_s3 + $0x20] sm:$0xff] (!%p259_p10)  ;;  %v881_v60 = vld [vmem:[%s1406_s3 + $0x28] sm:$0xff] (!%p259_p10) }
  0x16   : > { %s293_s19 = scalar_select %p292_p11, %s1145_s27, 1  ;;  %v882_v61 = vld [vmem:[%s1406_s3 + $0x30] sm:$0xff]  ;;  %v883_v62 = vld [vmem:[%s1406_s3 + $0x38] sm:$0xff]  ;;  %v694_v19 = vld [vmem:[%s1408_s5] sm:$0xf] }
  0x17   : > { %s1159_s27 = smov [#allocation2]  }
  0x18   : > { %s870_s22 = sshll.u32 %s293_s19, 2  ;;  %448 = vperm.xlu0 %1047, %v434_v9   ;;  %s1079_s17 = sshll.u32 %s1159_s27, 4  ;;  %s1080_s17 = int_to_ptr.vmem [resolvable:$false] %s1079_s17 }
  0x19   : > { %s298_s12 = scalar_lea.vmem %s1403_s0, %s870_s22  ;;  %453 = vperm.xlu1 %1048, %v435_v10   ;;  %s291_s22 = scalar_lea.vmem [#allocation2], %s869_s21 }
  0x1a   : > { %v303_v6 = vld [vmem:[%s298_s12] sm:$0xf]  ;;  %s793_s30 = sshll.u32 %s291_s22, 4  ;;  %s1356_s12 = scalar_lea.hbm %s1410_s7, %s890_s23  ;;  %s1358_s30 = int_to_ptr.vmem [resolvable:$true] %s793_s30 }
  0x1b   : > { %919 = vmatprep.subr.msk.mxu0 %vm341_vm1, %v303_v6  ;;  %s1075_s16 = scalar_lea.vmem %s1358_s30, 64  ;;  %s1081_s18 = scalar_lea.vmem %s1080_s17, 128 }
  0x1c   : > { %920 = vmatpush3.msk.msra.mxu0 %vm341_vm1, %v303_v6  ;;  %458 = vperm.xlu0 %1047, %v436_v12   ;;  %p1076_p12 = scmp.ne.s32.totalorder %s1358_s30, %s1075_s16  ;;  %p1082_p1 = scmp.lt.s32.totalorder %s1358_s30, %s1080_s17 }
  0x1d   : > { %922 = vmatmul.mubr.msk.f32.vlgmr.msra.gmra.mrb[0].mxu0 %vm328_vm0, %v300_v7  ;;  %463 = vperm.xlu1 %1048, %v437_v13   ;;  %p1083_p2 = scmp.lt.s32.totalorder %s1081_s18, %s1075_s16 }
  0x1e   : > { %924 = vmatprep.mubr.msk.f32.mxu0 %vm328_vm0, %v301_v8  ;;  %p1077_p13 = pnand %p1076_p12, %p1240_p4 }
  0x1f   : > { %p1084_p3 = por %p1083_p2, %p1082_p1 }
  0x20   : > { %575 = vperm.xlu0 %1047, %v438_v14   ;;  %p1078_p0 = pneg %p1077_p13 }
  0x21   : > { %925 = vmatmul.mubr.msk.f32.gmra.mrb[2].mxu0 %vm328_vm0, %v302_v11  ;;  %580 = vperm.xlu1 %1048, %v439_v15  }
  0x22   : > { %949 = vmatprep.mubr.msk.f32.mxu0 %vm466_vm2, %v880_v41  ;;  %p1085_p5 = pnand %p1084_p3, %p1078_p0 }
  0x24   : > { %585 = vperm.xlu0 %1047, %v440_v16  }
  0x25   : > { %590 = vperm.xlu1 %1048, %v441_v17  }
  0x28   : > { %698 = vperm.xlu0 %1047, %v695_v18  }
  0x8f   : > { %v311_v20 = vpop.permute.xlu0 %310 }
  0x90   : > { %v321_v21 = vpop.permute.xlu1 %320 }
  0x93   : > { %v316_v22 = vpop.permute.xlu0 %315 }
  0x94   : > { %v326_v27 = vpop.permute.xlu1 %325 }
  0x97   : > { %v449_v43 = vpop.permute.xlu0 %448 }
  0x98   : > { %v454_v42 = vpop.permute.xlu1 %453 }
  0x9b   : > { %v459_v50 = vpop.permute.xlu0 %458 }
  0x9c   : > { %v464_v48 = vpop.permute.xlu1 %463 }
  0x9f   : > { %v576_v2 = vpop.permute.xlu0 %575 }
  0xa0   : > { %v581_v1 = vpop.permute.xlu1 %580 }
  0xa3   : > { %v586_v9 = vpop.permute.xlu0 %585 }
  0xa4   : > { %v591_v7 = vpop.permute.xlu1 %590 }
  0xf0   : > { %v923_v23 = vpop.f32.mrb[0].mxu0 }
  0xf1   : > { %v417_v24 = vadd.f32 %v923_v23, %v316_v22  ;;  %v411_v25 = vpop.f32.mrb[1].mxu0 }
  0xf2   : > { %v412_v26 = vadd.f32 %v411_v25, %v311_v20  ;;  %v699_v20 = vpop.permute.xlu0 %698 }
  0xf3   : > { %1049 = vtanh.f32 %v417_v24 }
  0xf4   : > { %1051 = vtanh.f32 %v412_v26  ;;  %v926_v28 = vpop.f32.mrb[2].mxu0 }
  0xf5   : > { %v427_v29 = vadd.f32 %v926_v28, %v326_v27  ;;  %v421_v30 = vpop.f32.mrb[3].mxu0 }
  0xf6   : > { %v422_v31 = vadd.f32 %v421_v30, %v321_v21 }
  0xf7   : > { %1053 = vtanh.f32 %v427_v29 }
  0xf8   : > { %1055 = vtanh.f32 %v422_v31 }
  0xfd   : > { %v1050_v32 = vpop.eup %1049 }
  0xfe   : > { %v1052_v33 = vpop.eup %1051 }
  0xff   : > { %v966_v34 = vpack.c.bf16 %v1050_v32, %v1052_v33 }
 0x101   : > { %v1054_v35 = vpop.eup %1053  ;;  %967 = vmatprep.subr.bf16.mxu1 %v966_v34 }
 0x102   : > { %v1056_v36 = vpop.eup %1055  ;;  %969 = vmatpush3.bf16.msra.mxu1 %v966_v34 }
 0x103   : > { %v970_v37 = vpack.c.bf16 %v1054_v35, %v1056_v36 }
 0x105   : > { %971 = vmatprep.subr.bf16.mxu1 %v970_v37 }
 0x106   : > { %973 = vmatpush3.bf16.msra.mxu1 %v970_v37 }
 0x107   : > { %982 = vmatprep.subr.bf16.mxu1 %v1156_v63 }
 0x109   : > { %936 = vmatmul.mubr.msk.f32.vlgmr.msra.gmra.mrb[0].mxu1 %vm466_vm2, %v443_v38 }
 0x10a   : > { %938 = vmatprep.mubr.msk.f32.mxu1 %vm466_vm2, %v444_v39 }
 0x10d   : > { %939 = vmatmul.mubr.msk.f32.gmra.mrb[2].mxu1 %vm466_vm2, %v445_v40 }
 0x10e   : > { %963 = vmatprep.mubr.msk.f32.mxu1 %vm1157_vm3, %v1158_v0 }
 0x1dc   : > { %v937_v44 = vpop.f32.mrb[0].mxu1 }
 0x1dd   : > { %v551_v45 = vadd.f32 %v937_v44, %v454_v42  ;;  %v545_v46 = vpop.f32.mrb[1].mxu1 }
 0x1de   : > { %v546_v47 = vadd.f32 %v545_v46, %v449_v43 }
 0x1df   : > { %1057 = vtanh.f32 %v551_v45 }
 0x1e0   : > { %1059 = vtanh.f32 %v546_v47  ;;  %v940_v49 = vpop.f32.mrb[2].mxu1 }
 0x1e1   : > { %v561_v51 = vadd.f32 %v940_v49, %v464_v48  ;;  %v555_v52 = vpop.f32.mrb[3].mxu1 }
 0x1e2   : > { %v556_v53 = vadd.f32 %v555_v52, %v459_v50 }
 0x1e3   : > { %1061 = vtanh.f32 %v561_v51 }
 0x1e4   : > { %1063 = vtanh.f32 %v556_v53 }
 0x1e9   : > { %v1058_v54 = vpop.eup %1057 }
 0x1ea   : > { %v1060_v55 = vpop.eup %1059 }
 0x1eb   : > { %v974_v56 = vpack.c.bf16 %v1058_v54, %v1060_v55 }
 0x1ed   : > { %v1062_v57 = vpop.eup %1061  ;;  %975 = vmatprep.subr.bf16.mxu0 %v974_v56 }
 0x1ee   : > { %v1064_v58 = vpop.eup %1063  ;;  %977 = vmatpush3.bf16.msra.mxu0 %v974_v56 }
 0x1ef   : > { %v978_v59 = vpack.c.bf16 %v1062_v57, %v1064_v58 }
 0x1f1   : > { %979 = vmatprep.subr.bf16.mxu0 %v978_v59 }
 0x1f2   : > { %981 = vmatpush3.bf16.msra.mxu0 %v978_v59 }
 0x1f5   : > { %950 = vmatmul.mubr.msk.f32.vlgmr.msra.gmra.mrb[4].mxu0 %vm466_vm2, %v881_v60 }
 0x1f6   : > { %952 = vmatprep.mubr.msk.f32.mxu0 %vm466_vm2, %v882_v61 }
 0x1f9   : > { %953 = vmatmul.mubr.msk.f32.gmra.mrb[6].mxu0 %vm466_vm2, %v883_v62 }
 0x2c8   : > { %v951_v3 = vpop.f32.mrb[4].mxu0 }
 0x2c9   : > { %v677_v4 = vadd.f32 %v951_v3, %v581_v1  ;;  %v671_v5 = vpop.f32.mrb[5].mxu0 }
 0x2ca   : > { %v672_v6 = vadd.f32 %v671_v5, %v576_v2 }
 0x2cb   : > { %1065 = vtanh.f32 %v677_v4 }
 0x2cc   : > { %1067 = vtanh.f32 %v672_v6  ;;  %v954_v8 = vpop.f32.mrb[6].mxu0 }
 0x2cd   : > { %v687_v10 = vadd.f32 %v954_v8, %v591_v7  ;;  %v681_v11 = vpop.f32.mrb[7].mxu0 }
 0x2ce   : > { %v682_v12 = vadd.f32 %v681_v11, %v586_v9 }
 0x2cf   : > { %1069 = vtanh.f32 %v687_v10 }
 0x2d0   : > { %1071 = vtanh.f32 %v682_v12 }
 0x2d5   : > { %v1066_v13 = vpop.eup %1065 }
 0x2d6   : > { %v1068_v14 = vpop.eup %1067 }
 0x2d7   : > { %v983_v15 = vpack.c.bf16 %v1066_v13, %v1068_v14 }
 0x2d9   : > { %v1070_v16 = vpop.eup %1069  ;;  %984 = vmatpush3.bf16.msra.mxu1 %v983_v15 }
 0x2da   : > { %v1072_v17 = vpop.eup %1071  ;;  %985 = vmatprep.subr.bf16.mxu1 %v1156_v63 }
 0x2db   : > { %v986_v18 = vpack.c.bf16 %v1070_v16, %v1072_v17 }
 0x2dd   : > { %987 = vmatpush3.bf16.msra.mxu1 %v986_v18 }
 0x2e0   : > { %964 = vmatmul.mubr.msk.f32.vlgmr.msra.gmra.mrb[4].mxu1 %vm466_vm2, %v694_v19 }
 0x3b3   : > { %v770_v21 = vpop.f32.mrb[4].mxu1 }
 0x3b4   : > { %v771_v22 = vadd.f32 %v770_v21, %v699_v20  ;;  %v965_v23 = vpop.f32.mrb[5].mxu1 }
 0x3b6   : > { %v774_v24 = vmul.f32 1.442695, %v771_v22 }
 0x3b8   : > { %1073 = vpow2.f32 %v774_v24 }
 0x3c2   : > { %v1074_v25 = vpop.eup %1073 }
 0x3c3   : > { %777 = vst.msk [vmem:[%s291_s22] sm:$0xf] %vm776_vm4, %v1074_v25 }
 0x3c4   : > { %1088 = shalt.err (!%p1085_p5)
}
 0x3c5   : > { %s1089_s19 = scalar_lea.hbm %s1356_s12, 64  ;;  %s1093_s23 = scalar_lea.hbm %s1410_s7, 128 }
 0x3c6   : > { %p1090_p6 = scmp.ne.s32.totalorder %s1356_s12, %s1089_s19  ;;  %p1094_p10 = scmp.lt.u32.totalorder %s1356_s12, %s1410_s7 }
 0x3c7   : > { %p1095_p11 = scmp.lt.u32.totalorder %s1093_s23, %s1089_s19  ;;  %p1097_p13 = scmp.lt.u32.totalorder %s1089_s19, %s1356_s12 }
 0x3c8   : > { %p1091_p7 = pnand %p1090_p6, %p1240_p4 }
 0x3c9   : > { %p1096_p12 = por %p1095_p11, %p1094_p10 }
 0x3ca   : > { %p1092_p9 = pneg %p1091_p7 }
 0x3cb   : > { %p1098_p0 = por %p1097_p13, %p1096_p12 }
 0x3cd   : > { %p1099_p1 = pnand %p1098_p0, %p1092_p9 }
 0x3cf   : > { %1102 = shalt.err (!%p1099_p1)
}
 0x3d0   : > { %988 = dma.vmem_to_hbm [thread:$0]  (%p1240_p4), %s1358_s30, 64, %s1356_s12, %s779_s15  }
 0x3d1 PF: > { %p994_p2 = scmp.ge.s32.totalorder %s1153_s29, 2  ;;  %s805_s10 = sand.u32 1, %s1133_s24  }
 0x3d2   : > { %s806_s16 = scalar_lea.sflag [#allocation3], %s805_s10 }
 0x3d3   : > { %p991_p3 = pnand %p994_p2, %p1247_p8 }
 0x3d5   : > { %1128 = dma.done.wait (!%p991_p3), %s806_s16, 64  }
 0x3d6   : > { %1130 = vsyncadd (!%p991_p3), %s806_s16, 4294967232  ;;  %s20_s29 = sadd.s32 1, %s1153_s29   ;;  %s1413_s24 = smov %s1137_s25 }
 0x3d7   : > { %p17_p5 = scmp.ge.s32.totalorder %s20_s29, 4   ;;  %s1414_s25 = smov %s1141_s26 }
 0x3d8   : > { %s1415_s26 = smov %s1253_s14  ;;  %s1416_s27 = smov %s1149_s28 }
 0x3d9   : > { %s1417_s28 = smov %s1419_s9  ;;  %19 = sbr.rel (!%p17_p5) target bundleno = 4 (0x4), region = 84 }
 0x3e0   :  { %811 = vsyncpa [#allocation3], 1 }
 0x3e1   :  { %813 = vsyncpa [#allocation3 + $0x1], 1 }

</bundles_post_ra>
